<compile_context>
chip_gen: v6e
topology: v6e:2x2x1
jax: 0.10.0
libtpu: 0.0.40
codegen_flags: <defaults>
</compile_context>

<pallas_src>
import functools
import math

import numpy as np
import jax
import jax.numpy as jnp
from jax.experimental import pallas as pl
from jax.experimental.pallas import tpu as pltpu


def build_position_encodings(d_model: int, max_seq_len: int) -> jnp.ndarray:
    """Deterministic parameter setup matching the PyTorch __init__ loops."""
    # The original double loop indexes pe[i, pos] (transposed) which only works
    # when d_model == max_seq_len; keep the same constraint (bug-for-bug port).
    assert d_model == max_seq_len, "reference __init__ requires d_model == max_seq_len"
    pe = np.empty((max_seq_len, d_model), dtype=np.float32)
    for pos in range(max_seq_len):
        for i in range(0, d_model, 2):
            exponent = 2 * (i // 2) / d_model
            pe[i, pos] = math.sin(pos / 10000 ** exponent)
            pe[i + 1, pos] = math.cos(pos / 10000 ** exponent)
    return jnp.asarray(pe)


# ---------------- Pallas kernels ----------------

def _add_pe_kernel(x_ref, pe_ref, o_ref):
    # eval mode: nn.Dropout(p=0.1) is the identity
    o_ref[...] = (x_ref[...] + pe_ref[...]).astype(o_ref.dtype)   # (tb,ts,D)+(ts,D)


def _add_pe_dropout_kernel(seed_ref, x_ref, pe_ref, o_ref, *, p, S_total, D_total):
    # train mode: inverted dropout with a counter-based hash PRNG (no pltpu PRNG
    # primitives, so it also runs under the CPU interpret fallback).
    # Each element's random bits depend only on (seed, global element index), so
    # the mask is independent of tiling and both grid axes stay "parallel".
    # TODO(synk): RNG stream intentionally differs from torch.nn.Dropout.
    tb, ts, D = x_ref.shape
    s0 = pl.program_id(0) * ts          # seq tile (outer grid axis)
    b0 = pl.program_id(1) * tb          # batch tile (inner grid axis)

    shp = (tb, ts, D)
    bi = jax.lax.broadcasted_iota(jnp.int32, shp, 0) + b0
    si = jax.lax.broadcasted_iota(jnp.int32, shp, 1) + s0
    di = jax.lax.broadcasted_iota(jnp.int32, shp, 2)
    idx = (bi * S_total + si) * D_total + di                  # global element index

    # splitmix32-style finalizer; golden-ratio stride decorrelates nearby seeds.
    u = idx.astype(jnp.uint32) + seed_ref[0].astype(jnp.uint32) * jnp.uint32(0x9E3779B9)
    u = u ^ (u >> 16)
    u = u * jnp.uint32(0x7FEB352D)
    u = u ^ (u >> 15)
    u = u * jnp.uint32(0x846CA68B)
    u = u ^ (u >> 16)

    # Threshold truncation error in keep-probability is < 2**-32 (negligible).
    threshold = jnp.uint32(min(int(round(p * (2 ** 32))), 2 ** 32 - 1))
    keep = u >= threshold                                      # drop with probability p
    scale = jnp.float32(1.0 / (1.0 - p))

    y = (x_ref[...] + pe_ref[...]).astype(jnp.float32)         # (tb,ts,D)
    o_ref[...] = jnp.where(keep, y * scale, 0.0).astype(o_ref.dtype)


# ---------------- tiling heuristic ----------------

def _sublane_multiple(dtype) -> int:
    # second-to-last block dim packing: 8 for 4-byte, 16 for 2-byte, 32 for 1-byte
    return {4: 8, 2: 16, 1: 32}.get(jnp.dtype(dtype).itemsize, 8)


def _choose_tiles(B, S, D, dtype, target_bytes=4 << 20):
    """Pick (tb, ts): ~target_bytes x-blocks; robust to awkward S via cdiv grids."""
    itemsize = jnp.dtype(dtype).itemsize
    sub = _sublane_multiple(dtype)
    row_bytes = D * itemsize
    if S * row_bytes <= target_bytes:
        ts = S                                     # whole seq fits -> add batches
        tb = max(1, min(B, target_bytes // (S * row_bytes)))
    else:
        tb = 1
        ts = max(sub, (target_bytes // row_bytes) // sub * sub)
        ts = min(ts, S)
    return tb, ts


# ---------------- wrapper ----------------

def positional_encodings_forward(x, position_encodings, *, p=0.1,
                                 training=False, seed=0, donate_x=False):
    B, S, D = x.shape
    pe_slice = position_encodings[:, :S]           # matches pe[:, :x.size(1)]
    assert pe_slice.shape == (S, D), "reference broadcast requires S==max_seq_len, D==S"
    pe_slice = pe_slice.astype(x.dtype)            # halve PE DMA bytes for bf16 x

    itemsize = jnp.dtype(x.dtype).itemsize
    tb, ts = _choose_tiles(B, S, D, x.dtype)
    # seq axis OUTER, batch INNER: PE block index (j,0) is constant across the
    # inner batch steps -> Pallas skips the redundant PE re-fetch.
    grid = (pl.cdiv(S, ts), pl.cdiv(B, tb))

    out_shape = jax.ShapeDtypeStruct(x.shape, x.dtype)
    cost = pl.CostEstimate(
        flops=B * S * D,                           # one add per element
        transcendentals=0,
        bytes_accessed=2 * B * S * D * itemsize + S * D * itemsize,
    )
    # 48 MiB headroom is safe on all generations (v7x physical VMEM is 64 MiB;
    # v5e/v6e default scoped limits are 16/32 MiB of 128 MiB physical).
    cparams = pltpu.CompilerParams(
        dimension_semantics=("parallel", "parallel"),
        vmem_limit_bytes=48 << 20,
    )

    assert 0.0 <= p < 1.0, f"dropout p must be in [0,1), got {p}"
    if not training or p == 0.0:
        x_spec = pl.BlockSpec((tb, ts, D), lambda j, i: (i, j, 0))
        pe_spec = pl.BlockSpec((ts, D), lambda j, i: (j, 0))
        out_spec = pl.BlockSpec((tb, ts, D), lambda j, i: (i, j, 0))
        return pl.pallas_call(
            _add_pe_kernel,
            out_shape=out_shape,
            grid=grid,
            in_specs=[x_spec, pe_spec],
            out_specs=out_spec,
            input_output_aliases={0: 0} if donate_x else {},
            compiler_params=cparams,
            cost_estimate=cost,
        )(x, pe_slice)

    # Training path: seed lands in SMEM via scalar prefetch before the grid runs.
    seed_arr = jnp.asarray([seed], dtype=jnp.int32)
    x_spec = pl.BlockSpec((tb, ts, D), lambda j, i, seed_ref: (i, j, 0))
    pe_spec = pl.BlockSpec((ts, D), lambda j, i, seed_ref: (j, 0))
    out_spec = pl.BlockSpec((tb, ts, D), lambda j, i, seed_ref: (i, j, 0))
    return pl.pallas_call(
        functools.partial(_add_pe_dropout_kernel, p=p, S_total=S, D_total=D),
        out_shape=out_shape,
        grid_spec=pltpu.PrefetchScalarGridSpec(
            num_scalar_prefetch=1,
            grid=grid,
            in_specs=[x_spec, pe_spec],
            out_specs=out_spec,
        ),
        input_output_aliases={1: 0} if donate_x else {},   # x is operand 1 (after seed)
        compiler_params=cparams,
        cost_estimate=cost,
    )(seed_arr, x, pe_slice)


if __name__ == "__main__":
    # Shapes consistent with the module's constraints: d_model == max_seq_len == S == D
    d_model = 128
    max_seq_len = 128
    B = 2
    S = max_seq_len
    D = d_model

    pe = build_position_encodings(d_model, max_seq_len)
    x = jax.random.normal(jax.random.PRNGKey(0), (B, S, D), dtype=jnp.float32)
    ref = x + pe[:, :S]                            # pure-JAX reference of the add

    # eval-mode forward (dropout is identity) — deterministic, verifiable
    out = jax.block_until_ready(positional_encodings_forward(x, pe, training=False))
    assert out.shape == x.shape and out.dtype == x.dtype
    np.testing.assert_allclose(np.asarray(out), np.asarray(ref), rtol=1e-6, atol=1e-6)

    # training-mode forward (inverted dropout) — statistical / structural checks
    p = 0.1
    out_tr = jax.block_until_ready(
        positional_encodings_forward(x, pe, p=p, training=True, seed=1234))
    out_np = np.asarray(out_tr)
    ref_np = np.asarray(ref)
    assert out_np.shape == x.shape and np.all(np.isfinite(out_np))
    kept = out_np != 0.0
    np.testing.assert_allclose(out_np[kept], ref_np[kept] / (1.0 - p),
                               rtol=1e-5, atol=1e-5)
    drop_frac = 1.0 - kept.mean()
    assert 0.05 < drop_frac < 0.2, f"unexpected drop fraction {drop_frac}"

    print("KERNEL_OK")
</pallas_src>

<mosaic_0001>
module attributes {stable_mosaic.version = 11 : i64} {
  func.func @_add_pe_kernel(%arg0: i32, %arg1: i32, %arg2: memref<2x128x128xf32, #tpu.memory_space<vmem>>, %arg3: memref<128x128xf32, #tpu.memory_space<vmem>>, %arg4: memref<2x128x128xf32, #tpu.memory_space<vmem>>) attributes {dimension_semantics = [#tpu.dimension_semantics<parallel>, #tpu.dimension_semantics<parallel>], iteration_bounds = array<i64: 1, 1>, scalar_prefetch = 0 : i64, scratch_operands = 0 : i64, tpu.core_type = #tpu.core_type<tc>, window_params = [{transform_indices = @transform_0, window_bounds = array<i64: 2, 128, 128>}, {transform_indices = @transform_1, window_bounds = array<i64: 128, 128>}, {transform_indices = @transform_2, window_bounds = array<i64: 2, 128, 128>}]} {
    %c0 = arith.constant 0 : index
    %c0_0 = arith.constant 0 : index
    %c0_1 = arith.constant 0 : index
    %0 = vector.load %arg2[%c0, %c0_0, %c0_1] : memref<2x128x128xf32, #tpu.memory_space<vmem>>, vector<2x128x128xf32>
    %c0_2 = arith.constant 0 : index
    %c0_3 = arith.constant 0 : index
    %1 = vector.load %arg3[%c0_2, %c0_3] : memref<128x128xf32, #tpu.memory_space<vmem>>, vector<128x128xf32>
    %2 = vector.shape_cast %1 : vector<128x128xf32> to vector<1x128x128xf32>
    %3 = vector.broadcast %2 : vector<1x128x128xf32> to vector<2x128x128xf32>
    %4 = arith.addf %0, %3 : vector<2x128x128xf32>
    %c0_4 = arith.constant 0 : index
    %c0_5 = arith.constant 0 : index
    %c0_6 = arith.constant 0 : index
    %5 = vector.load %arg4[%c0_4, %c0_5, %c0_6] : memref<2x128x128xf32, #tpu.memory_space<vmem>>, vector<2x128x128xf32>
    tpu.vector_store %arg4[%c0_4, %c0_5, %c0_6], %4 {strides = array<i32>} : memref<2x128x128xf32, #tpu.memory_space<vmem>>, vector<2x128x128xf32>,
    return
  }
  func.func @transform_0(%arg0: i32, %arg1: i32) -> (i32, i32, i32) {
    %c0_i32 = arith.constant 0 : i32
    %c0_i32_0 = arith.constant 0 : i32
    return %arg1, %arg0, %c0_i32 : i32, i32, i32
  }
  func.func @transform_1(%arg0: i32, %arg1: i32) -> (i32, i32) {
    %c0_i32 = arith.constant 0 : i32
    %c0_i32_0 = arith.constant 0 : i32
    return %arg0, %c0_i32 : i32, i32
  }
  func.func @transform_2(%arg0: i32, %arg1: i32) -> (i32, i32, i32) {
    %c0_i32 = arith.constant 0 : i32
    %c0_i32_0 = arith.constant 0 : i32
    return %arg1, %arg0, %c0_i32 : i32, i32, i32
  }
}

</mosaic_0001>

<bundles_post_ra>
// kernel: tpu_custom_call.1
= control target key start
LH: loop header
LB: loop body
LE: loop exit
PB: predicated region body
PF: predicated region fallthrough
CT: control target
= control target key end

     0   :  { %7 = vsyncpa [#allocation3], 0  ;;  %s287_s0 = inlined_call_operand.hbm [shape: f32[2,128,128], index: 0, kind: input, shape index: {}]   ;;  %s288_s1 = inlined_call_operand.hbm [shape: f32[128,128], index: 1, kind: input, shape index: {}]   ;;  %s289_s2 = inlined_call_operand.hbm [shape: f32[2,128,128], index: 2, kind: output, shape index: {}]  }
   0x1   :  { %8 = vsyncpa [#allocation6], 0 }
   0x2   :  { %9 = vsyncpa [#allocation4], 0  ;;  %s241_s9 = smov [#allocation2]  }
   0x3   :  { %s15_s10 = sshll.u32 %s241_s9, 4  ;;  %s16_s10 = int_to_ptr.vmem [resolvable:$true] %s15_s10 }
   0x4   :  { %s183_s11 = scalar_lea.vmem %s16_s10, 4096  ;;  %p188_p1 = scmp.lt.s32.totalorder %s16_s10, %s16_s10 }
   0x5   :  { %p184_p0 = scmp.ne.s32.totalorder %s16_s10, %s183_s11  ;;  %p189_p2 = scmp.lt.s32.totalorder %s183_s11, %s183_s11 }
   0x7   :  { %p190_p3 = por %p189_p2, %p188_p1 }
   0x9   :  { %p191_p4 = pnand %p190_p3, %p184_p0 }
   0xb   :  { %194 = shalt.err (!%p191_p4)
}
   0xc   :  { %s242_s12 = smov 128   ;;  %s243_s13 = smov 8  }
   0xd   :  { %21 = dma.hbm_to_vmem [thread:$0]  %s287_s0, 4096, %s16_s10, [#allocation3], %s242_s12, %s242_s12, %s243_s13  }
   0xe   :  { %s244_s16 = smov [#allocation5]  }
   0xf   :  { %s27_s17 = sshll.u32 %s244_s16, 4  ;;  %s28_s17 = int_to_ptr.vmem [resolvable:$true] %s27_s17 }
  0x10   :  { %s203_s18 = scalar_lea.vmem %s28_s17, 2048  ;;  %p208_p6 = scmp.lt.s32.totalorder %s28_s17, %s28_s17 }
  0x11   :  { %p204_p5 = scmp.ne.s32.totalorder %s28_s17, %s203_s18  ;;  %p209_p7 = scmp.lt.s32.totalorder %s203_s18, %s203_s18 }
  0x13   :  { %p210_p8 = por %p209_p7, %p208_p6 }
  0x15   :  { %p211_p9 = pnand %p210_p8, %p204_p5 }
  0x17   :  { %214 = shalt.err (!%p211_p9)
}
  0x18   :  { %33 = dma.hbm_to_vmem [thread:$0]  %s288_s1, 2048, %s28_s17, [#allocation6], %s242_s12, %s242_s12, %s243_s13  }
  0x19   :  { %235 = dma.done.wait [#allocation3], 4096  }
  0x1a   :  { %236 = vsyncadd [#allocation3], 4294963200 }
  0x1b   :  { %237 = dma.done.wait [#allocation6], 2048  }
  0x1c   :  { %238 = vsyncadd [#allocation6], 4294965248  ;;  %v40_v0 = vld [vmem:[#allocation2] sm:$0xff]  ;;  %v41_v2 = vld [vmem:[#allocation2 + $0x8] sm:$0xff]  ;;  %s245_s0 = smov [#allocation7]  }
  0x1d   :  { %v72_v1 = vld [vmem:[#allocation5] sm:$0xff]  ;;  %v273_v4 = vld [vmem:[#allocation5 + $0x8] sm:$0xff]  ;;  %v42_v5 = vld [vmem:[#allocation2 + $0x10] sm:$0xff]  ;;  %s157_s1 = sshll.u32 %s245_s0, 4  ;;  %s158_s1 = int_to_ptr.vmem [resolvable:$true] %s157_s1 }
  0x1e   :  { %v88_v3 = vadd.f32 %v72_v1, %v40_v0  ;;  %v275_v6 = vld [vmem:[#allocation5 + $0x10] sm:$0xff]  ;;  %v89_v7 = vadd.f32 %v273_v4, %v41_v2  ;;  %v43_v9 = vld [vmem:[#allocation2 + $0x18] sm:$0xff]  ;;  %v44_v11 = vld [vmem:[#allocation2 + $0x20] sm:$0xff]  ;;  %s215_s21 = scalar_lea.vmem %s158_s1, 4096  ;;  %p220_p11 = scmp.lt.s32.totalorder %s158_s1, %s158_s1 }
  0x1f   :  { %v90_v8 = vadd.f32 %v275_v6, %v42_v5  ;;  %v75_v10 = vld [vmem:[#allocation5 + $0x18] sm:$0xff]  ;;  %v76_v13 = vld [vmem:[#allocation5 + $0x20] sm:$0xff]  ;;  %v45_v14 = vld [vmem:[#allocation2 + $0x28] sm:$0xff]  ;;  %p216_p10 = scmp.ne.s32.totalorder %s158_s1, %s215_s21  ;;  %p221_p12 = scmp.lt.s32.totalorder %s215_s21, %s215_s21 }
  0x20   :  { %120 = vst [vmem:[#allocation7] sm:$0xff] %v88_v3  ;;  %v91_v12 = vadd.f32 %v75_v10, %v43_v9  ;;  %v77_v15 = vld [vmem:[#allocation5 + $0x28] sm:$0xff]  ;;  %121 = vst [vmem:[#allocation7 + $0x8] sm:$0xff] %v89_v7  ;;  %v92_v16 = vadd.f32 %v76_v13, %v44_v11  ;;  %v46_v18 = vld [vmem:[#allocation2 + $0x30] sm:$0xff] }
  0x21   :  { %122 = vst [vmem:[#allocation7 + $0x10] sm:$0xff] %v90_v8  ;;  %v93_v17 = vadd.f32 %v77_v15, %v45_v14  ;;  %v78_v19 = vld [vmem:[#allocation5 + $0x30] sm:$0xff]  ;;  %v47_v20 = vld [vmem:[#allocation2 + $0x38] sm:$0xff]  ;;  %v48_v23 = vld [vmem:[#allocation2 + $0x40] sm:$0xff]  ;;  %p222_p13 = por %p221_p12, %p220_p11 }
  0x22   :  { %123 = vst [vmem:[#allocation7 + $0x18] sm:$0xff] %v91_v12  ;;  %v94_v21 = vadd.f32 %v78_v19, %v46_v18  ;;  %v79_v22 = vld [vmem:[#allocation5 + $0x38] sm:$0xff]  ;;  %v80_v24 = vld [vmem:[#allocation5 + $0x40] sm:$0xff]  ;;  %124 = vst [vmem:[#allocation7 + $0x20] sm:$0xff] %v92_v16 }
  0x23   :  { %125 = vst [vmem:[#allocation7 + $0x28] sm:$0xff] %v93_v17  ;;  %v95_v25 = vadd.f32 %v79_v22, %v47_v20  ;;  %v96_v26 = vadd.f32 %v80_v24, %v48_v23  ;;  %v49_v27 = vld [vmem:[#allocation2 + $0x48] sm:$0xff]  ;;  %v50_v29 = vld [vmem:[#allocation2 + $0x50] sm:$0xff]  ;;  %v51_v32 = vld [vmem:[#allocation2 + $0x58] sm:$0xff]  ;;  %p223_p0 = pnand %p222_p13, %p216_p10 }
  0x24   :  { %v81_v28 = vld [vmem:[#allocation5 + $0x48] sm:$0xff]  ;;  %126 = vst [vmem:[#allocation7 + $0x30] sm:$0xff] %v94_v21  ;;  %v82_v31 = vld [vmem:[#allocation5 + $0x50] sm:$0xff]  ;;  %v83_v33 = vld [vmem:[#allocation5 + $0x58] sm:$0xff] }
  0x25   :  { %v97_v30 = vadd.f32 %v81_v28, %v49_v27  ;;  %127 = vst [vmem:[#allocation7 + $0x38] sm:$0xff] %v95_v25  ;;  %128 = vst [vmem:[#allocation7 + $0x40] sm:$0xff] %v96_v26  ;;  %v98_v34 = vadd.f32 %v82_v31, %v50_v29  ;;  %v99_v35 = vadd.f32 %v83_v33, %v51_v32  ;;  %v52_v36 = vld [vmem:[#allocation2 + $0x60] sm:$0xff]  ;;  %v53_v38 = vld [vmem:[#allocation2 + $0x68] sm:$0xff] }
  0x26   :  { %v84_v37 = vld [vmem:[#allocation5 + $0x60] sm:$0xff]  ;;  %v85_v40 = vld [vmem:[#allocation5 + $0x68] sm:$0xff]  ;;  %v54_v41 = vld [vmem:[#allocation2 + $0x70] sm:$0xff] }
  0x27   :  { %129 = vst [vmem:[#allocation7 + $0x48] sm:$0xff] %v97_v30  ;;  %v100_v39 = vadd.f32 %v84_v37, %v52_v36  ;;  %v86_v42 = vld [vmem:[#allocation5 + $0x70] sm:$0xff]  ;;  %130 = vst [vmem:[#allocation7 + $0x50] sm:$0xff] %v98_v34  ;;  %v101_v43 = vadd.f32 %v85_v40, %v53_v38  ;;  %v55_v45 = vld [vmem:[#allocation2 + $0x78] sm:$0xff] }
  0x28   :  { %131 = vst [vmem:[#allocation7 + $0x58] sm:$0xff] %v99_v35  ;;  %v102_v44 = vadd.f32 %v86_v42, %v54_v41  ;;  %v87_v46 = vld [vmem:[#allocation5 + $0x78] sm:$0xff]  ;;  %v56_v47 = vld [vmem:[#allocation2 + $0x80] sm:$0xff]  ;;  %v57_v50 = vld [vmem:[#allocation2 + $0x88] sm:$0xff] }
  0x29   :  { %132 = vst [vmem:[#allocation7 + $0x60] sm:$0xff] %v100_v39  ;;  %v103_v48 = vadd.f32 %v87_v46, %v55_v45  ;;  %v104_v49 = vadd.f32 %v72_v1, %v56_v47  ;;  %v58_v51 = vld [vmem:[#allocation2 + $0x90] sm:$0xff]  ;;  %v59_v52 = vld [vmem:[#allocation2 + $0x98] sm:$0xff]  ;;  %133 = vst [vmem:[#allocation7 + $0x68] sm:$0xff] %v101_v43  ;;  %v105_v53 = vadd.f32 %v273_v4, %v57_v50 }
  0x2a   :  { %134 = vst [vmem:[#allocation7 + $0x70] sm:$0xff] %v102_v44  ;;  %v106_v54 = vadd.f32 %v275_v6, %v58_v51  ;;  %v107_v55 = vadd.f32 %v75_v10, %v59_v52  ;;  %v60_v56 = vld [vmem:[#allocation2 + $0xa0] sm:$0xff]  ;;  %v61_v57 = vld [vmem:[#allocation2 + $0xa8] sm:$0xff]  ;;  %v62_v58 = vld [vmem:[#allocation2 + $0xb0] sm:$0xff] }
  0x2b   :  { %135 = vst [vmem:[#allocation7 + $0x78] sm:$0xff] %v103_v48  ;;  %136 = vst [vmem:[#allocation7 + $0x80] sm:$0xff] %v104_v49  ;;  %v108_v59 = vadd.f32 %v76_v13, %v60_v56  ;;  %v109_v60 = vadd.f32 %v77_v15, %v61_v57  ;;  %v110_v61 = vadd.f32 %v78_v19, %v62_v58  ;;  %v63_v62 = vld [vmem:[#allocation2 + $0xb8] sm:$0xff]  ;;  %v64_v63 = vld [vmem:[#allocation2 + $0xc0] sm:$0xff] }
  0x2c   :  { %v65_v0 = vld [vmem:[#allocation2 + $0xc8] sm:$0xff]  ;;  %137 = vst [vmem:[#allocation7 + $0x88] sm:$0xff] %v105_v53  ;;  %138 = vst [vmem:[#allocation7 + $0x90] sm:$0xff] %v106_v54  ;;  %v111_v1 = vadd.f32 %v79_v22, %v63_v62  ;;  %v112_v2 = vadd.f32 %v80_v24, %v64_v63  ;;  %v66_v4 = vld [vmem:[#allocation2 + $0xd0] sm:$0xff] }
  0x2d   :  { %139 = vst [vmem:[#allocation7 + $0x98] sm:$0xff] %v107_v55  ;;  %v113_v3 = vadd.f32 %v81_v28, %v65_v0  ;;  %v67_v5 = vld [vmem:[#allocation2 + $0xd8] sm:$0xff]  ;;  %v68_v6 = vld [vmem:[#allocation2 + $0xe0] sm:$0xff]  ;;  %140 = vst [vmem:[#allocation7 + $0xa0] sm:$0xff] %v108_v59  ;;  %v114_v7 = vadd.f32 %v82_v31, %v66_v4 }
  0x2e   :  { %141 = vst [vmem:[#allocation7 + $0xa8] sm:$0xff] %v109_v60  ;;  %142 = vst [vmem:[#allocation7 + $0xb0] sm:$0xff] %v110_v61  ;;  %v115_v8 = vadd.f32 %v83_v33, %v67_v5  ;;  %v116_v9 = vadd.f32 %v84_v37, %v68_v6  ;;  %v69_v10 = vld [vmem:[#allocation2 + $0xe8] sm:$0xff]  ;;  %v70_v11 = vld [vmem:[#allocation2 + $0xf0] sm:$0xff] }
  0x2f   :  { %v71_v12 = vld [vmem:[#allocation2 + $0xf8] sm:$0xff]  ;;  %143 = vst [vmem:[#allocation7 + $0xb8] sm:$0xff] %v111_v1  ;;  %144 = vst [vmem:[#allocation7 + $0xc0] sm:$0xff] %v112_v2  ;;  %v117_v13 = vadd.f32 %v85_v40, %v69_v10  ;;  %v118_v14 = vadd.f32 %v86_v42, %v70_v11 }
  0x30   :  { %145 = vst [vmem:[#allocation7 + $0xc8] sm:$0xff] %v113_v3  ;;  %v119_v15 = vadd.f32 %v87_v46, %v71_v12  ;;  %146 = vst [vmem:[#allocation7 + $0xd0] sm:$0xff] %v114_v7 }
  0x31   :  { %147 = vst [vmem:[#allocation7 + $0xd8] sm:$0xff] %v115_v8  ;;  %148 = vst [vmem:[#allocation7 + $0xe0] sm:$0xff] %v116_v9 }
  0x32   :  { %149 = vst [vmem:[#allocation7 + $0xe8] sm:$0xff] %v117_v13  ;;  %150 = vst [vmem:[#allocation7 + $0xf0] sm:$0xff] %v118_v14 }
  0x33   :  { %151 = vst [vmem:[#allocation7 + $0xf8] sm:$0xff] %v119_v15 }
  0x34   :  { %226 = shalt.err (!%p223_p0)
}
  0x35   :  { %163 = dma.vmem_to_hbm [thread:$0]  %s158_s1, 4096, %s289_s2, [#allocation4], %s242_s12, %s242_s12, %s243_s13  }
  0x36   :  { %239 = dma.done.wait [#allocation4], 4096  }
  0x37   :  { %240 = vsyncadd [#allocation4], 4294963200 }
  0x38   :  { %167 = vsyncpa [#allocation3], 1 }
  0x39   :  { %168 = vsyncpa [#allocation6], 1 }
  0x3a   :  { %169 = vsyncpa [#allocation4], 1 }

</bundles_post_ra>
